<compile_context>
chip_gen: v6e
topology: v6e:2x2x1
jax: 0.10.0
libtpu: 0.0.40
codegen_flags: <defaults>
</compile_context>

<pallas_src>
import functools
import math

import jax
import jax.numpy as jnp
from jax.experimental import pallas as pl
from jax.experimental.pallas import tpu as pltpu


def _pick_row_tile(r, max_unroll=8):
    """Largest divisor of r that is <= max_unroll, preferring >= 2 grid steps
    (keeps both TensorCores busy on v7x)."""
    best = 1
    for t in range(1, min(r, max_unroll) + 1):
        if r % t == 0 and (r // t >= 2 or r == 1):
            best = t
    return best


# ----------------------------------------------------------------------------
# Fused 2x2 average-pool + 1x1 conv (bias-free) Pallas kernel.
# ----------------------------------------------------------------------------
def _down_stage_kernel(x_ref, w_ref, o_ref, *, c, rows):
    """x_ref: (rows, 2, W_out, 2*C) f32  -- tile of input row-pairs
       w_ref: (C, Cout) bf16             -- 1x1 conv weight (no bias)
       o_ref: (rows, W_out, Cout) f32
    """
    w = w_ref[...]
    for rr in range(rows):                      # small, unrolled at trace time
        xb = x_ref[rr]                          # (2, W_out, 2*C)
        top = xb[0]                             # (W_out, 2*C)
        bot = xb[1]
        # 2x2 average pool on the VPU: H-pair + W-pair (lane-split) sums.
        pooled = (top[:, :c] + top[:, c:] + bot[:, :c] + bot[:, c:]) * 0.25
        # 1x1 conv == matmul over channels; bf16 in, f32 accumulate (MXU).
        o_ref[rr] = jnp.dot(
            pooled.astype(jnp.bfloat16), w,
            preferred_element_type=jnp.float32,
        ).astype(o_ref.dtype)


def down_stage(x_nhwc, w_mat):
    """One Down block on an NHWC tensor. w_mat: (Cin, Cout) f32."""
    n, h, w, c = x_nhwc.shape
    cout = w_mat.shape[1]
    h_out = -(-h // 2)                          # ceil_mode=True
    w_out = -(-w // 2)
    pad_h = 2 * h_out - h
    pad_w = 2 * w_out - w
    if pad_h or pad_w:                          # zero-pad; divisor fixed below
        x_nhwc = jnp.pad(x_nhwc, ((0, 0), (0, pad_h), (0, pad_w), (0, 0)))

    r = n * h_out
    # Free contiguous regroup: (N, 2*H_out, 2*W_out, C) -> (N*H_out, 2, W_out, 2C)
    xr = x_nhwc.reshape(r, 2, w_out, 2 * c)

    rows = _pick_row_tile(r)
    kernel = functools.partial(_down_stage_kernel, c=c, rows=rows)

    out = pl.pallas_call(
        kernel,
        out_shape=jax.ShapeDtypeStruct((r, w_out, cout), jnp.float32),
        grid=(r // rows,),
        in_specs=[
            pl.BlockSpec((rows, 2, w_out, 2 * c), lambda i: (i, 0, 0, 0)),
            pl.BlockSpec((c, cout), lambda i: (0, 0)),
        ],
        out_specs=pl.BlockSpec((rows, w_out, cout), lambda i: (i, 0, 0)),
        compiler_params=pltpu.CompilerParams(
            dimension_semantics=("parallel",)),
    )(xr, w_mat.astype(jnp.bfloat16))

    out = out.reshape(n, h_out, w_out, cout)

    # AvgPool2d(ceil_mode=True, count_include_pad=False): overhanging windows
    # divide by the number of *valid* elements.  The kernel divided by 4, so
    # rescale the affected edge(s) — valid because the conv is linear, no bias.
    if pad_h:
        out = out.at[:, -1, :, :].multiply(2.0)
    if pad_w:
        out = out.at[:, :, -1, :].multiply(2.0)
    return out


# ----------------------------------------------------------------------------
# DownSample forward (NCHW in / NCHW out, matching the PyTorch module).
# ----------------------------------------------------------------------------
def downsample_forward(x_nchw, weights):
    x = jnp.transpose(x_nchw, (0, 2, 3, 1))     # NCHW -> NHWC
    for w_mat in weights:
        x = down_stage(x, w_mat)
    return jnp.transpose(x, (0, 3, 1, 2))       # NHWC -> NCHW


def init_params(key, in_channels, scale_factor, chan_factor=2):
    """Deterministic synthetic weights: one (Cin, Cout) matrix per Down stage."""
    n_stages = int(math.log2(scale_factor))
    weights = []
    c = in_channels
    for _ in range(n_stages):
        key, wk = jax.random.split(key)
        cout = int(c * chan_factor)
        w = jax.random.normal(wk, (c, cout), jnp.float32) / math.sqrt(c)
        weights.append(w)
        c = cout
    return weights


# ----------------------------------------------------------------------------
# Plain-JAX reference (for correctness check only).
# ----------------------------------------------------------------------------
def _reference_forward(x_nchw, weights):
    x = x_nchw
    for w_mat in weights:
        n, c, h, w = x.shape
        h_out, w_out = -(-h // 2), -(-w // 2)
        xp = jnp.pad(x, ((0, 0), (0, 0), (0, 2 * h_out - h), (0, 2 * w_out - w)))
        s = xp.reshape(n, c, h_out, 2, w_out, 2).sum(axis=(3, 5))
        div_h = jnp.where(jnp.arange(h_out) == h_out - 1,
                          float(2 - (2 * h_out - h)), 2.0)
        div_w = jnp.where(jnp.arange(w_out) == w_out - 1,
                          float(2 - (2 * w_out - w)), 2.0)
        pooled = s / (div_h[:, None] * div_w[None, :])
        x = jnp.einsum("nchw,cd->ndhw", pooled, w_mat)
    return x


if __name__ == "__main__":
    key = jax.random.PRNGKey(0)
    pkey, xkey = jax.random.split(key)

    in_channels, scale_factor, chan_factor = 4, 4, 2    # -> 2 Down stages
    weights = init_params(pkey, in_channels, scale_factor, chan_factor)

    # NCHW input, small shapes: batch=2, channels=4, spatial=16
    x = jax.random.normal(xkey, (2, in_channels, 16, 16), jnp.float32)

    fwd = jax.jit(lambda inp: downsample_forward(inp, weights))
    out = jax.block_until_ready(fwd(x))

    assert out.shape == (2, in_channels * chan_factor ** 2, 4, 4), out.shape
    assert bool(jnp.all(jnp.isfinite(out)))

    ref = _reference_forward(x, weights)
    max_err = float(jnp.max(jnp.abs(out - ref)))
    assert max_err < 3e-2, f"max abs error {max_err}"

    print("KERNEL_OK")
</pallas_src>

<mosaic_0001>
module attributes {stable_mosaic.version = 11 : i64} {
  func.func @_down_stage_kernel(%arg0: i32, %arg1: memref<8x2x8x8xf32, #tpu.memory_space<vmem>>, %arg2: memref<4x8xbf16, #tpu.memory_space<vmem>>, %arg3: memref<8x8x8xf32, #tpu.memory_space<vmem>>) attributes {dimension_semantics = [#tpu.dimension_semantics<parallel>], iteration_bounds = array<i64: 2>, scalar_prefetch = 0 : i64, scratch_operands = 0 : i64, tpu.core_type = #tpu.core_type<tc>, window_params = [{transform_indices = @transform_0, window_bounds = array<i64: 8, 2, 8, 8>}, {pipeline_mode = #tpu.pipeline_mode<synchronous>, transform_indices = @transform_1, window_bounds = array<i64: 4, 8>}, {transform_indices = @transform_2, window_bounds = array<i64: 8, 8, 8>}]} {
    %c0 = arith.constant 0 : index
    %c0_0 = arith.constant 0 : index
    %0 = vector.load %arg2[%c0, %c0_0] : memref<4x8xbf16, #tpu.memory_space<vmem>>, vector<4x8xbf16>
    %c0_1 = arith.constant 0 : index
    %c0_2 = arith.constant 0 : index
    %c0_3 = arith.constant 0 : index
    %c0_4 = arith.constant 0 : index
    %1 = vector.load %arg1[%c0_1, %c0_2, %c0_3, %c0_4] : memref<8x2x8x8xf32, #tpu.memory_space<vmem>>, vector<1x2x8x8xf32>
    %2 = vector.shape_cast %1 : vector<1x2x8x8xf32> to vector<2x8x8xf32>
    %3 = vector.extract_strided_slice %2 {offsets = [0, 0, 0], sizes = [1, 8, 8], strides = [1, 1, 1]} : vector<2x8x8xf32> to vector<1x8x8xf32>
    %4 = vector.shape_cast %3 : vector<1x8x8xf32> to vector<8x8xf32>
    %5 = vector.extract_strided_slice %2 {offsets = [1, 0, 0], sizes = [1, 8, 8], strides = [1, 1, 1]} : vector<2x8x8xf32> to vector<1x8x8xf32>
    %6 = vector.shape_cast %5 : vector<1x8x8xf32> to vector<8x8xf32>
    %7 = vector.extract_strided_slice %4 {offsets = [0, 0], sizes = [8, 4], strides = [1, 1]} : vector<8x8xf32> to vector<8x4xf32>
    %8 = vector.extract_strided_slice %4 {offsets = [0, 4], sizes = [8, 4], strides = [1, 1]} : vector<8x8xf32> to vector<8x4xf32>
    %9 = arith.addf %7, %8 : vector<8x4xf32>
    %10 = vector.extract_strided_slice %6 {offsets = [0, 0], sizes = [8, 4], strides = [1, 1]} : vector<8x8xf32> to vector<8x4xf32>
    %11 = arith.addf %9, %10 : vector<8x4xf32>
    %12 = vector.extract_strided_slice %6 {offsets = [0, 4], sizes = [8, 4], strides = [1, 1]} : vector<8x8xf32> to vector<8x4xf32>
    %13 = arith.addf %11, %12 : vector<8x4xf32>
    %cst = arith.constant 2.500000e-01 : f32
    %14 = vector.broadcast %cst : f32 to vector<8x4xf32>
    %15 = arith.mulf %13, %14 : vector<8x4xf32>
    %16 = arith.truncf %15 : vector<8x4xf32> to vector<8x4xbf16>
    %cst_5 = arith.constant dense<0.000000e+00> : vector<8x8xf32>
    %17 = tpu.matmul %16, %0, %cst_5 {dimension_numbers = #tpu.dot_dimension_numbers<[1], [0], [0], [1], [0, 0, 1, 1], [], []>} : vector<8x4xbf16>, vector<4x8xbf16>, vector<8x8xf32> -> vector<8x8xf32>
    %c0_6 = arith.constant 0 : index
    %c0_7 = arith.constant 0 : index
    %c0_8 = arith.constant 0 : index
    %18 = vector.load %arg3[%c0_6, %c0_7, %c0_8] : memref<8x8x8xf32, #tpu.memory_space<vmem>>, vector<1x8x8xf32>
    %19 = vector.shape_cast %18 : vector<1x8x8xf32> to vector<8x8xf32>
    %20 = vector.shape_cast %17 : vector<8x8xf32> to vector<1x8x8xf32>
    tpu.vector_store %arg3[%c0_6, %c0_7, %c0_8], %20 {strides = array<i32>} : memref<8x8x8xf32, #tpu.memory_space<vmem>>, vector<1x8x8xf32>,
    %c1 = arith.constant 1 : index
    %c0_9 = arith.constant 0 : index
    %c0_10 = arith.constant 0 : index
    %c0_11 = arith.constant 0 : index
    %21 = vector.load %arg1[%c1, %c0_9, %c0_10, %c0_11] : memref<8x2x8x8xf32, #tpu.memory_space<vmem>>, vector<1x2x8x8xf32>
    %22 = vector.shape_cast %21 : vector<1x2x8x8xf32> to vector<2x8x8xf32>
    %23 = vector.extract_strided_slice %22 {offsets = [0, 0, 0], sizes = [1, 8, 8], strides = [1, 1, 1]} : vector<2x8x8xf32> to vector<1x8x8xf32>
    %24 = vector.shape_cast %23 : vector<1x8x8xf32> to vector<8x8xf32>
    %25 = vector.extract_strided_slice %22 {offsets = [1, 0, 0], sizes = [1, 8, 8], strides = [1, 1, 1]} : vector<2x8x8xf32> to vector<1x8x8xf32>
    %26 = vector.shape_cast %25 : vector<1x8x8xf32> to vector<8x8xf32>
    %27 = vector.extract_strided_slice %24 {offsets = [0, 0], sizes = [8, 4], strides = [1, 1]} : vector<8x8xf32> to vector<8x4xf32>
    %28 = vector.extract_strided_slice %24 {offsets = [0, 4], sizes = [8, 4], strides = [1, 1]} : vector<8x8xf32> to vector<8x4xf32>
    %29 = arith.addf %27, %28 : vector<8x4xf32>
    %30 = vector.extract_strided_slice %26 {offsets = [0, 0], sizes = [8, 4], strides = [1, 1]} : vector<8x8xf32> to vector<8x4xf32>
    %31 = arith.addf %29, %30 : vector<8x4xf32>
    %32 = vector.extract_strided_slice %26 {offsets = [0, 4], sizes = [8, 4], strides = [1, 1]} : vector<8x8xf32> to vector<8x4xf32>
    %33 = arith.addf %31, %32 : vector<8x4xf32>
    %cst_12 = arith.constant 2.500000e-01 : f32
    %34 = vector.broadcast %cst_12 : f32 to vector<8x4xf32>
    %35 = arith.mulf %33, %34 : vector<8x4xf32>
    %36 = arith.truncf %35 : vector<8x4xf32> to vector<8x4xbf16>
    %cst_13 = arith.constant dense<0.000000e+00> : vector<8x8xf32>
    %37 = tpu.matmul %36, %0, %cst_13 {dimension_numbers = #tpu.dot_dimension_numbers<[1], [0], [0], [1], [0, 0, 1, 1], [], []>} : vector<8x4xbf16>, vector<4x8xbf16>, vector<8x8xf32> -> vector<8x8xf32>
    %c1_14 = arith.constant 1 : index
    %c0_15 = arith.constant 0 : index
    %c0_16 = arith.constant 0 : index
    %38 = vector.load %arg3[%c1_14, %c0_15, %c0_16] : memref<8x8x8xf32, #tpu.memory_space<vmem>>, vector<1x8x8xf32>
    %39 = vector.shape_cast %38 : vector<1x8x8xf32> to vector<8x8xf32>
    %40 = vector.shape_cast %37 : vector<8x8xf32> to vector<1x8x8xf32>
    tpu.vector_store %arg3[%c1_14, %c0_15, %c0_16], %40 {strides = array<i32>} : memref<8x8x8xf32, #tpu.memory_space<vmem>>, vector<1x8x8xf32>,
    %c2 = arith.constant 2 : index
    %c0_17 = arith.constant 0 : index
    %c0_18 = arith.constant 0 : index
    %c0_19 = arith.constant 0 : index
    %41 = vector.load %arg1[%c2, %c0_17, %c0_18, %c0_19] : memref<8x2x8x8xf32, #tpu.memory_space<vmem>>, vector<1x2x8x8xf32>
    %42 = vector.shape_cast %41 : vector<1x2x8x8xf32> to vector<2x8x8xf32>
    %43 = vector.extract_strided_slice %42 {offsets = [0, 0, 0], sizes = [1, 8, 8], strides = [1, 1, 1]} : vector<2x8x8xf32> to vector<1x8x8xf32>
    %44 = vector.shape_cast %43 : vector<1x8x8xf32> to vector<8x8xf32>
    %45 = vector.extract_strided_slice %42 {offsets = [1, 0, 0], sizes = [1, 8, 8], strides = [1, 1, 1]} : vector<2x8x8xf32> to vector<1x8x8xf32>
    %46 = vector.shape_cast %45 : vector<1x8x8xf32> to vector<8x8xf32>
    %47 = vector.extract_strided_slice %44 {offsets = [0, 0], sizes = [8, 4], strides = [1, 1]} : vector<8x8xf32> to vector<8x4xf32>
    %48 = vector.extract_strided_slice %44 {offsets = [0, 4], sizes = [8, 4], strides = [1, 1]} : vector<8x8xf32> to vector<8x4xf32>
    %49 = arith.addf %47, %48 : vector<8x4xf32>
    %50 = vector.extract_strided_slice %46 {offsets = [0, 0], sizes = [8, 4], strides = [1, 1]} : vector<8x8xf32> to vector<8x4xf32>
    %51 = arith.addf %49, %50 : vector<8x4xf32>
    %52 = vector.extract_strided_slice %46 {offsets = [0, 4], sizes = [8, 4], strides = [1, 1]} : vector<8x8xf32> to vector<8x4xf32>
    %53 = arith.addf %51, %52 : vector<8x4xf32>
    %cst_20 = arith.constant 2.500000e-01 : f32
    %54 = vector.broadcast %cst_20 : f32 to vector<8x4xf32>
    %55 = arith.mulf %53, %54 : vector<8x4xf32>
    %56 = arith.truncf %55 : vector<8x4xf32> to vector<8x4xbf16>
    %cst_21 = arith.constant dense<0.000000e+00> : vector<8x8xf32>
    %57 = tpu.matmul %56, %0, %cst_21 {dimension_numbers = #tpu.dot_dimension_numbers<[1], [0], [0], [1], [0, 0, 1, 1], [], []>} : vector<8x4xbf16>, vector<4x8xbf16>, vector<8x8xf32> -> vector<8x8xf32>
    %c2_22 = arith.constant 2 : index
    %c0_23 = arith.constant 0 : index
    %c0_24 = arith.constant 0 : index
    %58 = vector.load %arg3[%c2_22, %c0_23, %c0_24] : memref<8x8x8xf32, #tpu.memory_space<vmem>>, vector<1x8x8xf32>
    %59 = vector.shape_cast %58 : vector<1x8x8xf32> to vector<8x8xf32>
    %60 = vector.shape_cast %57 : vector<8x8xf32> to vector<1x8x8xf32>
    tpu.vector_store %arg3[%c2_22, %c0_23, %c0_24], %60 {strides = array<i32>} : memref<8x8x8xf32, #tpu.memory_space<vmem>>, vector<1x8x8xf32>,
    %c3 = arith.constant 3 : index
    %c0_25 = arith.constant 0 : index
    %c0_26 = arith.constant 0 : index
    %c0_27 = arith.constant 0 : index
    %61 = vector.load %arg1[%c3, %c0_25, %c0_26, %c0_27] : memref<8x2x8x8xf32, #tpu.memory_space<vmem>>, vector<1x2x8x8xf32>
    %62 = vector.shape_cast %61 : vector<1x2x8x8xf32> to vector<2x8x8xf32>
    %63 = vector.extract_strided_slice %62 {offsets = [0, 0, 0], sizes = [1, 8, 8], strides = [1, 1, 1]} : vector<2x8x8xf32> to vector<1x8x8xf32>
    %64 = vector.shape_cast %63 : vector<1x8x8xf32> to vector<8x8xf32>
    %65 = vector.extract_strided_slice %62 {offsets = [1, 0, 0], sizes = [1, 8, 8], strides = [1, 1, 1]} : vector<2x8x8xf32> to vector<1x8x8xf32>
    %66 = vector.shape_cast %65 : vector<1x8x8xf32> to vector<8x8xf32>
    %67 = vector.extract_strided_slice %64 {offsets = [0, 0], sizes = [8, 4], strides = [1, 1]} : vector<8x8xf32> to vector<8x4xf32>
    %68 = vector.extract_strided_slice %64 {offsets = [0, 4], sizes = [8, 4], strides = [1, 1]} : vector<8x8xf32> to vector<8x4xf32>
    %69 = arith.addf %67, %68 : vector<8x4xf32>
    %70 = vector.extract_strided_slice %66 {offsets = [0, 0], sizes = [8, 4], strides = [1, 1]} : vector<8x8xf32> to vector<8x4xf32>
    %71 = arith.addf %69, %70 : vector<8x4xf32>
    %72 = vector.extract_strided_slice %66 {offsets = [0, 4], sizes = [8, 4], strides = [1, 1]} : vector<8x8xf32> to vector<8x4xf32>
    %73 = arith.addf %71, %72 : vector<8x4xf32>
    %cst_28 = arith.constant 2.500000e-01 : f32
    %74 = vector.broadcast %cst_28 : f32 to vector<8x4xf32>
    %75 = arith.mulf %73, %74 : vector<8x4xf32>
    %76 = arith.truncf %75 : vector<8x4xf32> to vector<8x4xbf16>
    %cst_29 = arith.constant dense<0.000000e+00> : vector<8x8xf32>
    %77 = tpu.matmul %76, %0, %cst_29 {dimension_numbers = #tpu.dot_dimension_numbers<[1], [0], [0], [1], [0, 0, 1, 1], [], []>} : vector<8x4xbf16>, vector<4x8xbf16>, vector<8x8xf32> -> vector<8x8xf32>
    %c3_30 = arith.constant 3 : index
    %c0_31 = arith.constant 0 : index
    %c0_32 = arith.constant 0 : index
    %78 = vector.load %arg3[%c3_30, %c0_31, %c0_32] : memref<8x8x8xf32, #tpu.memory_space<vmem>>, vector<1x8x8xf32>
    %79 = vector.shape_cast %78 : vector<1x8x8xf32> to vector<8x8xf32>
    %80 = vector.shape_cast %77 : vector<8x8xf32> to vector<1x8x8xf32>
    tpu.vector_store %arg3[%c3_30, %c0_31, %c0_32], %80 {strides = array<i32>} : memref<8x8x8xf32, #tpu.memory_space<vmem>>, vector<1x8x8xf32>,
    %c4 = arith.constant 4 : index
    %c0_33 = arith.constant 0 : index
    %c0_34 = arith.constant 0 : index
    %c0_35 = arith.constant 0 : index
    %81 = vector.load %arg1[%c4, %c0_33, %c0_34, %c0_35] : memref<8x2x8x8xf32, #tpu.memory_space<vmem>>, vector<1x2x8x8xf32>
    %82 = vector.shape_cast %81 : vector<1x2x8x8xf32> to vector<2x8x8xf32>
    %83 = vector.extract_strided_slice %82 {offsets = [0, 0, 0], sizes = [1, 8, 8], strides = [1, 1, 1]} : vector<2x8x8xf32> to vector<1x8x8xf32>
    %84 = vector.shape_cast %83 : vector<1x8x8xf32> to vector<8x8xf32>
    %85 = vector.extract_strided_slice %82 {offsets = [1, 0, 0], sizes = [1, 8, 8], strides = [1, 1, 1]} : vector<2x8x8xf32> to vector<1x8x8xf32>
    %86 = vector.shape_cast %85 : vector<1x8x8xf32> to vector<8x8xf32>
    %87 = vector.extract_strided_slice %84 {offsets = [0, 0], sizes = [8, 4], strides = [1, 1]} : vector<8x8xf32> to vector<8x4xf32>
    %88 = vector.extract_strided_slice %84 {offsets = [0, 4], sizes = [8, 4], strides = [1, 1]} : vector<8x8xf32> to vector<8x4xf32>
    %89 = arith.addf %87, %88 : vector<8x4xf32>
    %90 = vector.extract_strided_slice %86 {offsets = [0, 0], sizes = [8, 4], strides = [1, 1]} : vector<8x8xf32> to vector<8x4xf32>
    %91 = arith.addf %89, %90 : vector<8x4xf32>
    %92 = vector.extract_strided_slice %86 {offsets = [0, 4], sizes = [8, 4], strides = [1, 1]} : vector<8x8xf32> to vector<8x4xf32>
    %93 = arith.addf %91, %92 : vector<8x4xf32>
    %cst_36 = arith.constant 2.500000e-01 : f32
    %94 = vector.broadcast %cst_36 : f32 to vector<8x4xf32>
    %95 = arith.mulf %93, %94 : vector<8x4xf32>
    %96 = arith.truncf %95 : vector<8x4xf32> to vector<8x4xbf16>
    %cst_37 = arith.constant dense<0.000000e+00> : vector<8x8xf32>
    %97 = tpu.matmul %96, %0, %cst_37 {dimension_numbers = #tpu.dot_dimension_numbers<[1], [0], [0], [1], [0, 0, 1, 1], [], []>} : vector<8x4xbf16>, vector<4x8xbf16>, vector<8x8xf32> -> vector<8x8xf32>
    %c4_38 = arith.constant 4 : index
    %c0_39 = arith.constant 0 : index
    %c0_40 = arith.constant 0 : index
    %98 = vector.load %arg3[%c4_38, %c0_39, %c0_40] : memref<8x8x8xf32, #tpu.memory_space<vmem>>, vector<1x8x8xf32>
    %99 = vector.shape_cast %98 : vector<1x8x8xf32> to vector<8x8xf32>
    %100 = vector.shape_cast %97 : vector<8x8xf32> to vector<1x8x8xf32>
    tpu.vector_store %arg3[%c4_38, %c0_39, %c0_40], %100 {strides = array<i32>} : memref<8x8x8xf32, #tpu.memory_space<vmem>>, vector<1x8x8xf32>,
    %c5 = arith.constant 5 : index
    %c0_41 = arith.constant 0 : index
    %c0_42 = arith.constant 0 : index
    %c0_43 = arith.constant 0 : index
    %101 = vector.load %arg1[%c5, %c0_41, %c0_42, %c0_43] : memref<8x2x8x8xf32, #tpu.memory_space<vmem>>, vector<1x2x8x8xf32>
    %102 = vector.shape_cast %101 : vector<1x2x8x8xf32> to vector<2x8x8xf32>
    %103 = vector.extract_strided_slice %102 {offsets = [0, 0, 0], sizes = [1, 8, 8], strides = [1, 1, 1]} : vector<2x8x8xf32> to vector<1x8x8xf32>
    %104 = vector.shape_cast %103 : vector<1x8x8xf32> to vector<8x8xf32>
    %105 = vector.extract_strided_slice %102 {offsets = [1, 0, 0], sizes = [1, 8, 8], strides = [1, 1, 1]} : vector<2x8x8xf32> to vector<1x8x8xf32>
    %106 = vector.shape_cast %105 : vector<1x8x8xf32> to vector<8x8xf32>
    %107 = vector.extract_strided_slice %104 {offsets = [0, 0], sizes = [8, 4], strides = [1, 1]} : vector<8x8xf32> to vector<8x4xf32>
    %108 = vector.extract_strided_slice %104 {offsets = [0, 4], sizes = [8, 4], strides = [1, 1]} : vector<8x8xf32> to vector<8x4xf32>
    %109 = arith.addf %107, %108 : vector<8x4xf32>
    %110 = vector.extract_strided_slice %106 {offsets = [0, 0], sizes = [8, 4], strides = [1, 1]} : vector<8x8xf32> to vector<8x4xf32>
    %111 = arith.addf %109, %110 : vector<8x4xf32>
    %112 = vector.extract_strided_slice %106 {offsets = [0, 4], sizes = [8, 4], strides = [1, 1]} : vector<8x8xf32> to vector<8x4xf32>
    %113 = arith.addf %111, %112 : vector<8x4xf32>
    %cst_44 = arith.constant 2.500000e-01 : f32
    %114 = vector.broadcast %cst_44 : f32 to vector<8x4xf32>
    %115 = arith.mulf %113, %114 : vector<8x4xf32>
    %116 = arith.truncf %115 : vector<8x4xf32> to vector<8x4xbf16>
    %cst_45 = arith.constant dense<0.000000e+00> : vector<8x8xf32>
    %117 = tpu.matmul %116, %0, %cst_45 {dimension_numbers = #tpu.dot_dimension_numbers<[1], [0], [0], [1], [0, 0, 1, 1], [], []>} : vector<8x4xbf16>, vector<4x8xbf16>, vector<8x8xf32> -> vector<8x8xf32>
    %c5_46 = arith.constant 5 : index
    %c0_47 = arith.constant 0 : index
    %c0_48 = arith.constant 0 : index
    %118 = vector.load %arg3[%c5_46, %c0_47, %c0_48] : memref<8x8x8xf32, #tpu.memory_space<vmem>>, vector<1x8x8xf32>
    %119 = vector.shape_cast %118 : vector<1x8x8xf32> to vector<8x8xf32>
    %120 = vector.shape_cast %117 : vector<8x8xf32> to vector<1x8x8xf32>
    tpu.vector_store %arg3[%c5_46, %c0_47, %c0_48], %120 {strides = array<i32>} : memref<8x8x8xf32, #tpu.memory_space<vmem>>, vector<1x8x8xf32>,
    %c6 = arith.constant 6 : index
    %c0_49 = arith.constant 0 : index
    %c0_50 = arith.constant 0 : index
    %c0_51 = arith.constant 0 : index
    %121 = vector.load %arg1[%c6, %c0_49, %c0_50, %c0_51] : memref<8x2x8x8xf32, #tpu.memory_space<vmem>>, vector<1x2x8x8xf32>
    %122 = vector.shape_cast %121 : vector<1x2x8x8xf32> to vector<2x8x8xf32>
    %123 = vector.extract_strided_slice %122 {offsets = [0, 0, 0], sizes = [1, 8, 8], strides = [1, 1, 1]} : vector<2x8x8xf32> to vector<1x8x8xf32>
    %124 = vector.shape_cast %123 : vector<1x8x8xf32> to vector<8x8xf32>
    %125 = vector.extract_strided_slice %122 {offsets = [1, 0, 0], sizes = [1, 8, 8], strides = [1, 1, 1]} : vector<2x8x8xf32> to vector<1x8x8xf32>
    %126 = vector.shape_cast %125 : vector<1x8x8xf32> to vector<8x8xf32>
    %127 = vector.extract_strided_slice %124 {offsets = [0, 0], sizes = [8, 4], strides = [1, 1]} : vector<8x8xf32> to vector<8x4xf32>
    %128 = vector.extract_strided_slice %124 {offsets = [0, 4], sizes = [8, 4], strides = [1, 1]} : vector<8x8xf32> to vector<8x4xf32>
    %129 = arith.addf %127, %128 : vector<8x4xf32>
    %130 = vector.extract_strided_slice %126 {offsets = [0, 0], sizes = [8, 4], strides = [1, 1]} : vector<8x8xf32> to vector<8x4xf32>
    %131 = arith.addf %129, %130 : vector<8x4xf32>
    %132 = vector.extract_strided_slice %126 {offsets = [0, 4], sizes = [8, 4], strides = [1, 1]} : vector<8x8xf32> to vector<8x4xf32>
    %133 = arith.addf %131, %132 : vector<8x4xf32>
    %cst_52 = arith.constant 2.500000e-01 : f32
    %134 = vector.broadcast %cst_52 : f32 to vector<8x4xf32>
    %135 = arith.mulf %133, %134 : vector<8x4xf32>
    %136 = arith.truncf %135 : vector<8x4xf32> to vector<8x4xbf16>
    %cst_53 = arith.constant dense<0.000000e+00> : vector<8x8xf32>
    %137 = tpu.matmul %136, %0, %cst_53 {dimension_numbers = #tpu.dot_dimension_numbers<[1], [0], [0], [1], [0, 0, 1, 1], [], []>} : vector<8x4xbf16>, vector<4x8xbf16>, vector<8x8xf32> -> vector<8x8xf32>
    %c6_54 = arith.constant 6 : index
    %c0_55 = arith.constant 0 : index
    %c0_56 = arith.constant 0 : index
    %138 = vector.load %arg3[%c6_54, %c0_55, %c0_56] : memref<8x8x8xf32, #tpu.memory_space<vmem>>, vector<1x8x8xf32>
    %139 = vector.shape_cast %138 : vector<1x8x8xf32> to vector<8x8xf32>
    %140 = vector.shape_cast %137 : vector<8x8xf32> to vector<1x8x8xf32>
    tpu.vector_store %arg3[%c6_54, %c0_55, %c0_56], %140 {strides = array<i32>} : memref<8x8x8xf32, #tpu.memory_space<vmem>>, vector<1x8x8xf32>,
    %c7 = arith.constant 7 : index
    %c0_57 = arith.constant 0 : index
    %c0_58 = arith.constant 0 : index
    %c0_59 = arith.constant 0 : index
    %141 = vector.load %arg1[%c7, %c0_57, %c0_58, %c0_59] : memref<8x2x8x8xf32, #tpu.memory_space<vmem>>, vector<1x2x8x8xf32>
    %142 = vector.shape_cast %141 : vector<1x2x8x8xf32> to vector<2x8x8xf32>
    %143 = vector.extract_strided_slice %142 {offsets = [0, 0, 0], sizes = [1, 8, 8], strides = [1, 1, 1]} : vector<2x8x8xf32> to vector<1x8x8xf32>
    %144 = vector.shape_cast %143 : vector<1x8x8xf32> to vector<8x8xf32>
    %145 = vector.extract_strided_slice %142 {offsets = [1, 0, 0], sizes = [1, 8, 8], strides = [1, 1, 1]} : vector<2x8x8xf32> to vector<1x8x8xf32>
    %146 = vector.shape_cast %145 : vector<1x8x8xf32> to vector<8x8xf32>
    %147 = vector.extract_strided_slice %144 {offsets = [0, 0], sizes = [8, 4], strides = [1, 1]} : vector<8x8xf32> to vector<8x4xf32>
    %148 = vector.extract_strided_slice %144 {offsets = [0, 4], sizes = [8, 4], strides = [1, 1]} : vector<8x8xf32> to vector<8x4xf32>
    %149 = arith.addf %147, %148 : vector<8x4xf32>
    %150 = vector.extract_strided_slice %146 {offsets = [0, 0], sizes = [8, 4], strides = [1, 1]} : vector<8x8xf32> to vector<8x4xf32>
    %151 = arith.addf %149, %150 : vector<8x4xf32>
    %152 = vector.extract_strided_slice %146 {offsets = [0, 4], sizes = [8, 4], strides = [1, 1]} : vector<8x8xf32> to vector<8x4xf32>
    %153 = arith.addf %151, %152 : vector<8x4xf32>
    %cst_60 = arith.constant 2.500000e-01 : f32
    %154 = vector.broadcast %cst_60 : f32 to vector<8x4xf32>
    %155 = arith.mulf %153, %154 : vector<8x4xf32>
    %156 = arith.truncf %155 : vector<8x4xf32> to vector<8x4xbf16>
    %cst_61 = arith.constant dense<0.000000e+00> : vector<8x8xf32>
    %157 = tpu.matmul %156, %0, %cst_61 {dimension_numbers = #tpu.dot_dimension_numbers<[1], [0], [0], [1], [0, 0, 1, 1], [], []>} : vector<8x4xbf16>, vector<4x8xbf16>, vector<8x8xf32> -> vector<8x8xf32>
    %c7_62 = arith.constant 7 : index
    %c0_63 = arith.constant 0 : index
    %c0_64 = arith.constant 0 : index
    %158 = vector.load %arg3[%c7_62, %c0_63, %c0_64] : memref<8x8x8xf32, #tpu.memory_space<vmem>>, vector<1x8x8xf32>
    %159 = vector.shape_cast %158 : vector<1x8x8xf32> to vector<8x8xf32>
    %160 = vector.shape_cast %157 : vector<8x8xf32> to vector<1x8x8xf32>
    tpu.vector_store %arg3[%c7_62, %c0_63, %c0_64], %160 {strides = array<i32>} : memref<8x8x8xf32, #tpu.memory_space<vmem>>, vector<1x8x8xf32>,
    return
  }
  func.func @transform_0(%arg0: i32) -> (i32, i32, i32, i32) {
    %c0_i32 = arith.constant 0 : i32
    %c0_i32_0 = arith.constant 0 : i32
    %c0_i32_1 = arith.constant 0 : i32
    %c0_i32_2 = arith.constant 0 : i32
    return %arg0, %c0_i32, %c0_i32_0, %c0_i32_1 : i32, i32, i32, i32
  }
  func.func @transform_1(%arg0: i32) -> (i32, i32) {
    %c0_i32 = arith.constant 0 : i32
    %c0_i32_0 = arith.constant 0 : i32
    %c0_i32_1 = arith.constant 0 : i32
    return %c0_i32, %c0_i32_0 : i32, i32
  }
  func.func @transform_2(%arg0: i32) -> (i32, i32, i32) {
    %c0_i32 = arith.constant 0 : i32
    %c0_i32_0 = arith.constant 0 : i32
    %c0_i32_1 = arith.constant 0 : i32
    return %arg0, %c0_i32, %c0_i32_0 : i32, i32, i32
  }
}

module attributes {stable_mosaic.version = 11 : i64} {
  func.func @_down_stage_kernel(%arg0: i32, %arg1: memref<4x2x4x16xf32, #tpu.memory_space<vmem>>, %arg2: memref<8x16xbf16, #tpu.memory_space<vmem>>, %arg3: memref<4x4x16xf32, #tpu.memory_space<vmem>>) attributes {dimension_semantics = [#tpu.dimension_semantics<parallel>], iteration_bounds = array<i64: 2>, scalar_prefetch = 0 : i64, scratch_operands = 0 : i64, tpu.core_type = #tpu.core_type<tc>, window_params = [{transform_indices = @transform_0, window_bounds = array<i64: 4, 2, 4, 16>}, {pipeline_mode = #tpu.pipeline_mode<synchronous>, transform_indices = @transform_1, window_bounds = array<i64: 8, 16>}, {transform_indices = @transform_2, window_bounds = array<i64: 4, 4, 16>}]} {
    %c0 = arith.constant 0 : index
    %c0_0 = arith.constant 0 : index
    %0 = vector.load %arg2[%c0, %c0_0] : memref<8x16xbf16, #tpu.memory_space<vmem>>, vector<8x16xbf16>
    %c0_1 = arith.constant 0 : index
    %c0_2 = arith.constant 0 : index
    %c0_3 = arith.constant 0 : index
    %c0_4 = arith.constant 0 : index
    %1 = vector.load %arg1[%c0_1, %c0_2, %c0_3, %c0_4] : memref<4x2x4x16xf32, #tpu.memory_space<vmem>>, vector<1x2x4x16xf32>
    %2 = vector.shape_cast %1 : vector<1x2x4x16xf32> to vector<2x4x16xf32>
    %3 = vector.extract_strided_slice %2 {offsets = [0, 0, 0], sizes = [1, 4, 16], strides = [1, 1, 1]} : vector<2x4x16xf32> to vector<1x4x16xf32>
    %4 = vector.shape_cast %3 : vector<1x4x16xf32> to vector<4x16xf32>
    %5 = vector.extract_strided_slice %2 {offsets = [1, 0, 0], sizes = [1, 4, 16], strides = [1, 1, 1]} : vector<2x4x16xf32> to vector<1x4x16xf32>
    %6 = vector.shape_cast %5 : vector<1x4x16xf32> to vector<4x16xf32>
    %7 = vector.extract_strided_slice %4 {offsets = [0, 0], sizes = [4, 8], strides = [1, 1]} : vector<4x16xf32> to vector<4x8xf32>
    %8 = vector.extract_strided_slice %4 {offsets = [0, 8], sizes = [4, 8], strides = [1, 1]} : vector<4x16xf32> to vector<4x8xf32>
    %9 = arith.addf %7, %8 : vector<4x8xf32>
    %10 = vector.extract_strided_slice %6 {offsets = [0, 0], sizes = [4, 8], strides = [1, 1]} : vector<4x16xf32> to vector<4x8xf32>
    %11 = arith.addf %9, %10 : vector<4x8xf32>
    %12 = vector.extract_strided_slice %6 {offsets = [0, 8], sizes = [4, 8], strides = [1, 1]} : vector<4x16xf32> to vector<4x8xf32>
    %13 = arith.addf %11, %12 : vector<4x8xf32>
    %cst = arith.constant 2.500000e-01 : f32
    %14 = vector.broadcast %cst : f32 to vector<4x8xf32>
    %15 = arith.mulf %13, %14 : vector<4x8xf32>
    %16 = arith.truncf %15 : vector<4x8xf32> to vector<4x8xbf16>
    %cst_5 = arith.constant dense<0.000000e+00> : vector<4x16xf32>
    %17 = tpu.matmul %16, %0, %cst_5 {dimension_numbers = #tpu.dot_dimension_numbers<[1], [0], [0], [1], [0, 0, 1, 1], [], []>} : vector<4x8xbf16>, vector<8x16xbf16>, vector<4x16xf32> -> vector<4x16xf32>
    %c0_6 = arith.constant 0 : index
    %c0_7 = arith.constant 0 : index
    %c0_8 = arith.constant 0 : index
    %18 = vector.load %arg3[%c0_6, %c0_7, %c0_8] : memref<4x4x16xf32, #tpu.memory_space<vmem>>, vector<1x4x16xf32>
    %19 = vector.shape_cast %18 : vector<1x4x16xf32> to vector<4x16xf32>
    %20 = vector.shape_cast %17 : vector<4x16xf32> to vector<1x4x16xf32>
    tpu.vector_store %arg3[%c0_6, %c0_7, %c0_8], %20 {strides = array<i32>} : memref<4x4x16xf32, #tpu.memory_space<vmem>>, vector<1x4x16xf32>,
    %c1 = arith.constant 1 : index
    %c0_9 = arith.constant 0 : index
    %c0_10 = arith.constant 0 : index
    %c0_11 = arith.constant 0 : index
    %21 = vector.load %arg1[%c1, %c0_9, %c0_10, %c0_11] : memref<4x2x4x16xf32, #tpu.memory_space<vmem>>, vector<1x2x4x16xf32>
    %22 = vector.shape_cast %21 : vector<1x2x4x16xf32> to vector<2x4x16xf32>
    %23 = vector.extract_strided_slice %22 {offsets = [0, 0, 0], sizes = [1, 4, 16], strides = [1, 1, 1]} : vector<2x4x16xf32> to vector<1x4x16xf32>
    %24 = vector.shape_cast %23 : vector<1x4x16xf32> to vector<4x16xf32>
    %25 = vector.extract_strided_slice %22 {offsets = [1, 0, 0], sizes = [1, 4, 16], strides = [1, 1, 1]} : vector<2x4x16xf32> to vector<1x4x16xf32>
    %26 = vector.shape_cast %25 : vector<1x4x16xf32> to vector<4x16xf32>
    %27 = vector.extract_strided_slice %24 {offsets = [0, 0], sizes = [4, 8], strides = [1, 1]} : vector<4x16xf32> to vector<4x8xf32>
    %28 = vector.extract_strided_slice %24 {offsets = [0, 8], sizes = [4, 8], strides = [1, 1]} : vector<4x16xf32> to vector<4x8xf32>
    %29 = arith.addf %27, %28 : vector<4x8xf32>
    %30 = vector.extract_strided_slice %26 {offsets = [0, 0], sizes = [4, 8], strides = [1, 1]} : vector<4x16xf32> to vector<4x8xf32>
    %31 = arith.addf %29, %30 : vector<4x8xf32>
    %32 = vector.extract_strided_slice %26 {offsets = [0, 8], sizes = [4, 8], strides = [1, 1]} : vector<4x16xf32> to vector<4x8xf32>
    %33 = arith.addf %31, %32 : vector<4x8xf32>
    %cst_12 = arith.constant 2.500000e-01 : f32
    %34 = vector.broadcast %cst_12 : f32 to vector<4x8xf32>
    %35 = arith.mulf %33, %34 : vector<4x8xf32>
    %36 = arith.truncf %35 : vector<4x8xf32> to vector<4x8xbf16>
    %cst_13 = arith.constant dense<0.000000e+00> : vector<4x16xf32>
    %37 = tpu.matmul %36, %0, %cst_13 {dimension_numbers = #tpu.dot_dimension_numbers<[1], [0], [0], [1], [0, 0, 1, 1], [], []>} : vector<4x8xbf16>, vector<8x16xbf16>, vector<4x16xf32> -> vector<4x16xf32>
    %c1_14 = arith.constant 1 : index
    %c0_15 = arith.constant 0 : index
    %c0_16 = arith.constant 0 : index
    %38 = vector.load %arg3[%c1_14, %c0_15, %c0_16] : memref<4x4x16xf32, #tpu.memory_space<vmem>>, vector<1x4x16xf32>
    %39 = vector.shape_cast %38 : vector<1x4x16xf32> to vector<4x16xf32>
    %40 = vector.shape_cast %37 : vector<4x16xf32> to vector<1x4x16xf32>
    tpu.vector_store %arg3[%c1_14, %c0_15, %c0_16], %40 {strides = array<i32>} : memref<4x4x16xf32, #tpu.memory_space<vmem>>, vector<1x4x16xf32>,
    %c2 = arith.constant 2 : index
    %c0_17 = arith.constant 0 : index
    %c0_18 = arith.constant 0 : index
    %c0_19 = arith.constant 0 : index
    %41 = vector.load %arg1[%c2, %c0_17, %c0_18, %c0_19] : memref<4x2x4x16xf32, #tpu.memory_space<vmem>>, vector<1x2x4x16xf32>
    %42 = vector.shape_cast %41 : vector<1x2x4x16xf32> to vector<2x4x16xf32>
    %43 = vector.extract_strided_slice %42 {offsets = [0, 0, 0], sizes = [1, 4, 16], strides = [1, 1, 1]} : vector<2x4x16xf32> to vector<1x4x16xf32>
    %44 = vector.shape_cast %43 : vector<1x4x16xf32> to vector<4x16xf32>
    %45 = vector.extract_strided_slice %42 {offsets = [1, 0, 0], sizes = [1, 4, 16], strides = [1, 1, 1]} : vector<2x4x16xf32> to vector<1x4x16xf32>
    %46 = vector.shape_cast %45 : vector<1x4x16xf32> to vector<4x16xf32>
    %47 = vector.extract_strided_slice %44 {offsets = [0, 0], sizes = [4, 8], strides = [1, 1]} : vector<4x16xf32> to vector<4x8xf32>
    %48 = vector.extract_strided_slice %44 {offsets = [0, 8], sizes = [4, 8], strides = [1, 1]} : vector<4x16xf32> to vector<4x8xf32>
    %49 = arith.addf %47, %48 : vector<4x8xf32>
    %50 = vector.extract_strided_slice %46 {offsets = [0, 0], sizes = [4, 8], strides = [1, 1]} : vector<4x16xf32> to vector<4x8xf32>
    %51 = arith.addf %49, %50 : vector<4x8xf32>
    %52 = vector.extract_strided_slice %46 {offsets = [0, 8], sizes = [4, 8], strides = [1, 1]} : vector<4x16xf32> to vector<4x8xf32>
    %53 = arith.addf %51, %52 : vector<4x8xf32>
    %cst_20 = arith.constant 2.500000e-01 : f32
    %54 = vector.broadcast %cst_20 : f32 to vector<4x8xf32>
    %55 = arith.mulf %53, %54 : vector<4x8xf32>
    %56 = arith.truncf %55 : vector<4x8xf32> to vector<4x8xbf16>
    %cst_21 = arith.constant dense<0.000000e+00> : vector<4x16xf32>
    %57 = tpu.matmul %56, %0, %cst_21 {dimension_numbers = #tpu.dot_dimension_numbers<[1], [0], [0], [1], [0, 0, 1, 1], [], []>} : vector<4x8xbf16>, vector<8x16xbf16>, vector<4x16xf32> -> vector<4x16xf32>
    %c2_22 = arith.constant 2 : index
    %c0_23 = arith.constant 0 : index
    %c0_24 = arith.constant 0 : index
    %58 = vector.load %arg3[%c2_22, %c0_23, %c0_24] : memref<4x4x16xf32, #tpu.memory_space<vmem>>, vector<1x4x16xf32>
    %59 = vector.shape_cast %58 : vector<1x4x16xf32> to vector<4x16xf32>
    %60 = vector.shape_cast %57 : vector<4x16xf32> to vector<1x4x16xf32>
    tpu.vector_store %arg3[%c2_22, %c0_23, %c0_24], %60 {strides = array<i32>} : memref<4x4x16xf32, #tpu.memory_space<vmem>>, vector<1x4x16xf32>,
    %c3 = arith.constant 3 : index
    %c0_25 = arith.constant 0 : index
    %c0_26 = arith.constant 0 : index
    %c0_27 = arith.constant 0 : index
    %61 = vector.load %arg1[%c3, %c0_25, %c0_26, %c0_27] : memref<4x2x4x16xf32, #tpu.memory_space<vmem>>, vector<1x2x4x16xf32>
    %62 = vector.shape_cast %61 : vector<1x2x4x16xf32> to vector<2x4x16xf32>
    %63 = vector.extract_strided_slice %62 {offsets = [0, 0, 0], sizes = [1, 4, 16], strides = [1, 1, 1]} : vector<2x4x16xf32> to vector<1x4x16xf32>
    %64 = vector.shape_cast %63 : vector<1x4x16xf32> to vector<4x16xf32>
    %65 = vector.extract_strided_slice %62 {offsets = [1, 0, 0], sizes = [1, 4, 16], strides = [1, 1, 1]} : vector<2x4x16xf32> to vector<1x4x16xf32>
    %66 = vector.shape_cast %65 : vector<1x4x16xf32> to vector<4x16xf32>
    %67 = vector.extract_strided_slice %64 {offsets = [0, 0], sizes = [4, 8], strides = [1, 1]} : vector<4x16xf32> to vector<4x8xf32>
    %68 = vector.extract_strided_slice %64 {offsets = [0, 8], sizes = [4, 8], strides = [1, 1]} : vector<4x16xf32> to vector<4x8xf32>
    %69 = arith.addf %67, %68 : vector<4x8xf32>
    %70 = vector.extract_strided_slice %66 {offsets = [0, 0], sizes = [4, 8], strides = [1, 1]} : vector<4x16xf32> to vector<4x8xf32>
    %71 = arith.addf %69, %70 : vector<4x8xf32>
    %72 = vector.extract_strided_slice %66 {offsets = [0, 8], sizes = [4, 8], strides = [1, 1]} : vector<4x16xf32> to vector<4x8xf32>
    %73 = arith.addf %71, %72 : vector<4x8xf32>
    %cst_28 = arith.constant 2.500000e-01 : f32
    %74 = vector.broadcast %cst_28 : f32 to vector<4x8xf32>
    %75 = arith.mulf %73, %74 : vector<4x8xf32>
    %76 = arith.truncf %75 : vector<4x8xf32> to vector<4x8xbf16>
    %cst_29 = arith.constant dense<0.000000e+00> : vector<4x16xf32>
    %77 = tpu.matmul %76, %0, %cst_29 {dimension_numbers = #tpu.dot_dimension_numbers<[1], [0], [0], [1], [0, 0, 1, 1], [], []>} : vector<4x8xbf16>, vector<8x16xbf16>, vector<4x16xf32> -> vector<4x16xf32>
    %c3_30 = arith.constant 3 : index
    %c0_31 = arith.constant 0 : index
    %c0_32 = arith.constant 0 : index
    %78 = vector.load %arg3[%c3_30, %c0_31, %c0_32] : memref<4x4x16xf32, #tpu.memory_space<vmem>>, vector<1x4x16xf32>
    %79 = vector.shape_cast %78 : vector<1x4x16xf32> to vector<4x16xf32>
    %80 = vector.shape_cast %77 : vector<4x16xf32> to vector<1x4x16xf32>
    tpu.vector_store %arg3[%c3_30, %c0_31, %c0_32], %80 {strides = array<i32>} : memref<4x4x16xf32, #tpu.memory_space<vmem>>, vector<1x4x16xf32>,
    return
  }
  func.func @transform_0(%arg0: i32) -> (i32, i32, i32, i32) {
    %c0_i32 = arith.constant 0 : i32
    %c0_i32_0 = arith.constant 0 : i32
    %c0_i32_1 = arith.constant 0 : i32
    %c0_i32_2 = arith.constant 0 : i32
    return %arg0, %c0_i32, %c0_i32_0, %c0_i32_1 : i32, i32, i32, i32
  }
  func.func @transform_1(%arg0: i32) -> (i32, i32) {
    %c0_i32 = arith.constant 0 : i32
    %c0_i32_0 = arith.constant 0 : i32
    %c0_i32_1 = arith.constant 0 : i32
    return %c0_i32, %c0_i32_0 : i32, i32
  }
  func.func @transform_2(%arg0: i32) -> (i32, i32, i32) {
    %c0_i32 = arith.constant 0 : i32
    %c0_i32_0 = arith.constant 0 : i32
    %c0_i32_1 = arith.constant 0 : i32
    return %arg0, %c0_i32, %c0_i32_0 : i32, i32, i32
  }
}

</mosaic_0001>

<bundles_post_ra>
// kernel: _lambda_.3
= control target key start
LH: loop header
LB: loop body
LE: loop exit
PB: predicated region body
PF: predicated region fallthrough
CT: control target
= control target key end

     0   :  { %7 = vsyncpa [#allocation3], 0  ;;  %s785_s0 = inlined_call_operand.vmem [shape: f32[8,2,4,16], index: 0, kind: input, shape index: {}]   ;;  %s786_s1 = inlined_call_operand.vmem [shape: bf16[8,16], index: 1, kind: input, shape index: {}]   ;;  %s787_s2 = inlined_call_operand.hbm [shape: f32[8,4,16], index: 2, kind: output, shape index: {}]  }
   0x1   :  { %9 = vsyncpa [#allocation3 + $0x1], 0  ;;  %s661_s9 = smov 0   ;;  %s663_s10 = smov 0  }
   0x2   :  { %s665_s11 = smov 0   ;;  %s667_s12 = smov 0  }
   0x3 LB: > { %s682_s13 = sadd.s32 4294967295, %s638_s12   ;;  %s474_s14 = sadd.s32 4294967294, %s638_s12   ;;  %s638_s12 = sphi %s667_s12, %s793_s12   ;;  %s634_s11 = sphi %s665_s11, %s792_s11   ;;  %s630_s10 = sphi %s663_s10, %s791_s10   ;;  %s626_s9 = sphi %s661_s9, %s790_s9  }
   0x4   : > { %s686_s15 = sadd.s32 1, %s638_s12   ;;  %s69_s16 = sadd.s32 1, %s634_s11 }
   0x5   : > { %s66_s17 = ssub.s32 %s638_s12, %s686_s15  ;;  %p79_p0 = scmp.ne.s32.totalorder %s634_s11, %s630_s10 }
   0x6   : > { %p67_p1 = scmp.eq.s32.totalorder %s66_s17, 0  ;;  %p80_p2 = scmp.eq.s32.totalorder %s682_s13, 1 }
   0x7   : > { %p85_p3 = scmp.ne.s32.totalorder %s630_s10, %s626_s9  ;;  %p86_p4 = scmp.eq.s32.totalorder %s474_s14, 1 }
   0x8   : > { %s697_s18 = scalar_select %p67_p1, %s634_s11, %s69_s16  }
   0x9   : > { %p699_p5 = por %p80_p2, %p79_p0  ;;  %p703_p6 = por %p86_p4, %p85_p3 }
   0xa   : > { %p477_p7 = scmp.ge.s32.totalorder %s638_s12, 1  ;;  %p117_p8 = scmp.lt.s32.totalorder %s638_s12, 3 }
   0xc   : > { %p118_p9 = pnand %p477_p7, %p117_p8 }
   0xd   : > { %s479_s21 = sshll.u32 (!%p118_p9), %s682_s13, 2  ;;  %s642_s28 = smov (!%p118_p9), 120  }
   0xe   : > { %121 = sbr.rel (%p118_p9) target bundleno = 370 (0x172), region = 28  ;;  %p141_p10 = scmp.lt.s32.totalorder (!%p118_p9), %s479_s21, 7 }
   0xf   : > { %s137_s29 = sand.u32 (!%p118_p9), 1, %s630_s10   ;;  %s501_s5 = sshll.u32 (!%p118_p9), %s682_s13, 8 }
  0x10   : > { %s478_s30 = sshll.u32 (!%p118_p9), %s137_s29, 4  ;;  %s742_s8 = scalar_lea.hbm (!%p118_p9), %s787_s2, %s501_s5 }
  0x11   : > { %s139_s3 = scalar_lea.vmem (!%p118_p9), [#allocation2], %s478_s30  ;;  %s745_s13 = scalar_lea.sflag (!%p118_p9), [#allocation3], %s137_s29 }
  0x12   : > { %s412_s4 = sshll.u32 (!%p118_p9), %s139_s3, 4  ;;  %s643_s16 = smov (!%p118_p9), [#allocation2]   ;;  %s737_s4 = int_to_ptr.vmem [resolvable:$true] %s412_s4 }
  0x13   : > { %v149_v0 = vld [vmem:[%s786_s1] sm:$0xf]  ;;  %vm169_vm0 = vcmask 1043456   ;;  %v640_v1 = vmov 0.0   ;;  %s795_s21 = smov (!%p141_p10, %s479_s21), 7  ;;  %vm641_vm1 = vmmov 0  }
  0x14   : > { %510 = vmatprep.subr.bf16.mxu0 %v640_v1  ;;  %v171_v2 = vsel %vm169_vm0, %v149_v0, 0  ;;  %516 = vmatprep.subr.bf16.mxu1 %v640_v1  ;;  %s500_s24 = sshll.u32 %s795_s21, 3  ;;  %vm165_vm2 = vcmask 64512   ;;  %vm213_vm3 = vcmask 125952   ;;  %s578_s14 = scalar_lea.vmem %s737_s4, 256 }
  0x15   : > { %511 = vmatpush3.bf16.msra.mxu0 %v171_v2  ;;  %517 = vmatpush3.bf16.msra.mxu1 %v171_v2  ;;  %s145_s27 = scalar_lea.vmem %s785_s0, %s500_s24  ;;  %p579_p11 = scmp.ne.s32.totalorder %s737_s4, %s578_s14 }
  0x16   : > { %522 = vmatprep.subr.bf16.mxu0 %v640_v1  ;;  %528 = vmatprep.subr.bf16.mxu1 %v640_v1  ;;  %v150_v3 = vld [vmem:[%s145_s27] sm:$0xf]  ;;  %v151_v4 = vld [vmem:[%s145_s27 + $0x4] sm:$0xf]  ;;  %v483_v5 = vld [vmem:[%s145_s27 + $0x8] sm:$0xf] }
  0x17   : > { %512 = vmatprep.mubr.msk.bf16.mxu0 %vm641_vm1, %v640_v1  ;;  %518 = vmatprep.mubr.msk.bf16.mxu1 %vm641_vm1, %v640_v1  ;;  %v484_v6 = vld [vmem:[%s145_s27 + $0xc] sm:$0xf]  ;;  %v487_v7 = vld [vmem:[%s145_s27 + $0x10] sm:$0xf]  ;;  %v491_v8 = vld [vmem:[%s145_s27 + $0x18] sm:$0xf]  ;;  %p580_p12 = pnand %p579_p11, %p699_p5 }
  0x18   : > { %153 = vrot.lane.b32.xlu0 %v150_v3, %s642_s28  ;;  %159 = vrot.lane.b32.xlu1 %v151_v4, %s642_s28  ;;  %v488_v9 = vld [vmem:[%s145_s27 + $0x14] sm:$0xf]  ;;  %v492_v10 = vld [vmem:[%s145_s27 + $0x1c] sm:$0xf]  ;;  %s582_s17 = sshll.u32 %s643_s16, 4  ;;  %s583_s17 = int_to_ptr.vmem [resolvable:$false] %s582_s17 }
  0x19   : > { %p581_p13 = pneg %p580_p12  ;;  %s584_s21 = scalar_lea.vmem %s583_s17, 512 }
  0x1a   : > { %p585_p0 = scmp.lt.s32.totalorder %s737_s4, %s583_s17  ;;  %p586_p1 = scmp.lt.s32.totalorder %s584_s21, %s578_s14 }
  0x1c   : > { %219 = vrot.lane.b32.xlu0 %v483_v5, %s642_s28  ;;  %225 = vrot.lane.b32.xlu1 %v484_v6, %s642_s28  ;;  %p587_p2 = por %p586_p1, %p585_p0 }
  0x1e   : > { %p588_p3 = pnand %p587_p2, %p581_p13 }
  0x20   : > { %280 = vrot.lane.b32.xlu0 %v487_v7, %s642_s28  ;;  %341 = vrot.lane.b32.xlu1 %v491_v8, %s642_s28 }
  0x24   : > { %286 = vrot.lane.b32.xlu0 %v488_v9, %s642_s28  ;;  %347 = vrot.lane.b32.xlu1 %v492_v10, %s642_s28 }
  0x8a   : > { %v154_v11 = vpop.permute.xlu0 %153  ;;  %v160_v12 = vpop.permute.xlu1 %159 }
  0x8b   : > { %v156_v13 = vadd.f32 %v154_v11, %v150_v3 }
  0x8d   : > { %v157_v14 = vadd.f32 %v156_v13, %v151_v4 }
  0x8e   : > { %v220_v15 = vpop.permute.xlu0 %219  ;;  %v226_v16 = vpop.permute.xlu1 %225 }
  0x8f   : > { %v162_v17 = vadd.f32 %v160_v12, %v157_v14  ;;  %v222_v18 = vadd.f32 %v483_v5, %v220_v15 }
  0x91   : > { %v163_v19 = vmul.f32 0.25, %v162_v17  ;;  %v223_v20 = vadd.f32 %v484_v6, %v222_v18 }
  0x92   : > { %v281_v21 = vpop.permute.xlu0 %280  ;;  %v342_v22 = vpop.permute.xlu1 %341 }
  0x93   : > { %v164_v23 = vpack.c.bf16 %v163_v19, %v163_v19  ;;  %v228_v24 = vadd.f32 %v226_v16, %v223_v20  ;;  %v283_v25 = vadd.f32 %v487_v7, %v281_v21  ;;  %v344_v26 = vadd.f32 %v491_v8, %v342_v22 }
  0x95   : > { %v229_v27 = vmul.f32 0.25, %v228_v24  ;;  %513 = vmatmul.mubr.msk.bf16.vlgmr.msra.gmra.mxu0 %vm165_vm2, %v164_v23  ;;  %v284_v28 = vadd.f32 %v488_v9, %v283_v25  ;;  %v345_v29 = vadd.f32 %v492_v10, %v344_v26 }
  0x96   : > { %v287_v30 = vpop.permute.xlu0 %286  ;;  %523 = vmatpush3.bf16.msra.mxu0 %v171_v2  ;;  %v348_v31 = vpop.permute.xlu1 %347  ;;  %524 = vmatprep.mubr.msk.bf16.mxu0 %vm641_vm1, %v640_v1 }
  0x97   : > { %v230_v32 = vpack.c.bf16 %v229_v27, %v229_v27  ;;  %v289_v33 = vadd.f32 %v287_v30, %v284_v28  ;;  %v350_v34 = vadd.f32 %v348_v31, %v345_v29 }
  0x99   : > { %v290_v35 = vmul.f32 0.25, %v289_v33  ;;  %519 = vmatmul.mubr.msk.bf16.vlgmr.msra.gmra.mxu1 %vm165_vm2, %v230_v32  ;;  %v351_v36 = vmul.f32 0.25, %v350_v34 }
  0x9a   : > { %529 = vmatpush3.bf16.msra.mxu1 %v171_v2  ;;  %530 = vmatprep.mubr.msk.bf16.mxu1 %vm641_vm1, %v640_v1 }
  0x9b   : > { %v291_v37 = vpack.c.bf16 %v290_v35, %v290_v35  ;;  %v352_v38 = vpack.c.bf16 %v351_v36, %v351_v36 }
  0x9d   : > { %525 = vmatmul.mubr.msk.bf16.vlgmr.msra.gmra.mxu0 %vm165_vm2, %v291_v37 }
  0xa1   : > { %531 = vmatmul.mubr.msk.bf16.vlgmr.msra.gmra.mxu1 %vm165_vm2, %v352_v38 }
 0x155   : > { %v207_v39 = vpop.f32.mrf.mxu0 }
 0x156   : > { %214 = vst.msk [vmem:[%s139_s3] sm:$0xf] %vm213_vm3, %v207_v39 }
 0x157   : > { %v514_v40 = vpop.f32.mrf.mxu0 }
 0x159   : > { %v210_v41 = vpop.f32.mrf.mxu0  ;;  %v268_v42 = vpop.f32.mrf.mxu1 }
 0x15a   : > { %486 = vst.msk [vmem:[%s139_s3 + $0x4] sm:$0xf] %vm213_vm3, %v268_v42 }
 0x15b   : > { %v515_v43 = vpop.f32.mrf.mxu0  ;;  %v520_v44 = vpop.f32.mrf.mxu1 }
 0x15d   : > { %v271_v45 = vpop.f32.mrf.mxu1  ;;  %v329_v46 = vpop.f32.mrf.mxu0 }
 0x15e   : > { %490 = vst.msk [vmem:[%s139_s3 + $0x8] sm:$0xf] %vm213_vm3, %v329_v46 }
 0x15f   : > { %v521_v47 = vpop.f32.mrf.mxu1  ;;  %v526_v48 = vpop.f32.mrf.mxu0 }
 0x161   : > { %v332_v49 = vpop.f32.mrf.mxu0  ;;  %v390_v50 = vpop.f32.mrf.mxu1 }
 0x162   : > { %494 = vst.msk [vmem:[%s139_s3 + $0xc] sm:$0xf] %vm213_vm3, %v390_v50 }
 0x163   : > { %v527_v51 = vpop.f32.mrf.mxu0  ;;  %v532_v52 = vpop.f32.mrf.mxu1 }
 0x164   : > { %591 = shalt.err (!%p588_p3)
}
 0x165   : > { %s592_s22 = scalar_lea.hbm %s742_s8, 256  ;;  %s596_s25 = scalar_lea.hbm %s787_s2, 512 }
 0x166   : > { %p593_p4 = scmp.ne.s32.totalorder %s742_s8, %s592_s22  ;;  %p597_p9 = scmp.lt.s32.totalorder %s742_s8, %s787_s2 }
 0x167   : > { %p598_p10 = scmp.lt.s32.totalorder %s596_s25, %s592_s22 }
 0x168   : > { %p594_p7 = pnand %p593_p4, %p699_p5 }
 0x169   : > { %p599_p11 = por %p598_p10, %p597_p9 }
 0x16a   : > { %p595_p8 = pneg %p594_p7 }
 0x16c   : > { %p600_p12 = pnand %p599_p11, %p595_p8 }
 0x16e   : > { %603 = shalt.err (!%p600_p12)
}
 0x16f   : > { %s644_s28 = smov 64   ;;  %s645_s29 = smov 4   ;;  %v393_v53 = vpop.f32.mrf.mxu1 }
 0x170   : > { %534 = dma.vmem_to_hbm [thread:$0]  (%p699_p5), %s737_s4, 256, %s742_s8, %s745_s13, %s644_s28, %s644_s28, %s645_s29  }
 0x171   : > { %v533_v54 = vpop.f32.mrf.mxu1 }
 0x172 PF: > { %p540_p13 = scmp.ge.s32.totalorder %s638_s12, 2  ;;  %s427_s30 = sand.u32 1, %s626_s9  }
 0x173   : > { %s428_s3 = scalar_lea.sflag [#allocation3], %s427_s30 }
 0x174   : > { %p537_p0 = pnand %p540_p13, %p703_p6 }
 0x176   : > { %p538_p1 = pneg %p537_p0 }
 0x178   : > { %621 = dma.done.wait (%p538_p1), %s428_s3, 256  }
 0x179   : > { %623 = vsyncadd (%p538_p1), %s428_s3, 4294967040  ;;  %p12_p5 = scmp.ge.s32.totalorder %s686_s15, 4   ;;  %s790_s9 = smov %s630_s10 }
 0x17a   : > { %s791_s10 = smov %s634_s11  ;;  %s792_s11 = smov %s697_s18 }
 0x17b   : > { %s793_s12 = smov %s686_s15  ;;  %14 = sbr.rel (!%p12_p5) target bundleno = 3 (0x3), region = 69 }
 0x180   :  { %433 = vsyncpa [#allocation3], 1 }
 0x181   :  { %435 = vsyncpa [#allocation3 + $0x1], 1 }

// kernel: _lambda_.2
= control target key start
LH: loop header
LB: loop body
LE: loop exit
PB: predicated region body
PF: predicated region fallthrough
CT: control target
= control target key end

     0   :  { %s843_s9 = smov 0   ;;  %s961_s0 = inlined_call_operand.vmem [shape: f32[16,2,8,8], index: 0, kind: input, shape index: {}]   ;;  %s962_s1 = inlined_call_operand.vmem [shape: bf16[4,8], index: 1, kind: input, shape index: {}]   ;;  %s963_s2 = inlined_call_operand.vmem [shape: f32[16,8,8], index: 2, kind: output, shape index: {}]  }
   0x1 LB: > { %s700_s10 = sadd.s32 4294967295, %s823_s9   ;;  %p704_p0 = scmp.ge.s32.totalorder %s823_s9, 1  ;;  %s823_s9 = sphi %s843_s9, %s12_s9  }
   0x2   : > { %p114_p1 = scmp.lt.s32.totalorder %s823_s9, 3 }
   0x4   : > { %p115_p2 = pnand %p704_p0, %p114_p1 }
   0x5   : > { %s705_s11 = sshll.u32 (!%p115_p2), %s700_s10, 3  ;;  %s827_s18 = smov (!%p115_p2), 124  }
   0x6   : > { %118 = sbr.rel (%p115_p2) target bundleno = 368 (0x170), region = 28  ;;  %p138_p3 = scmp.lt.s32.totalorder (!%p115_p2), %s705_s11, 15 }
   0xb   : > { %v151_v0 = vld [vmem:[%s962_s1] sm:$0x3]  ;;  %vm171_vm0 = vcmask 1041408   ;;  %v825_v1 = vmov 0.0   ;;  %s965_s11 = smov (!%p138_p3, %s705_s11), 15  ;;  %vm826_vm1 = vmmov 0  }
   0xc   : > { %758 = vmatprep.subr.bf16.mxu0 %v825_v1  ;;  %v855_v2 = vsel %vm171_vm0, %v151_v0, 0  ;;  %764 = vmatprep.subr.bf16.mxu1 %v825_v1  ;;  %s741_s14 = sshll.u32 %s965_s11, 4  ;;  %vm167_vm2 = vcmask 31744   ;;  %s709_s19 = sshll.u32 %s965_s11, 3  ;;  %vm215_vm3 = vcmask 64512  }
   0xd   : > { %759 = vmatpush3.bf16.msra.mxu0 %v855_v2  ;;  %765 = vmatpush3.bf16.msra.mxu1 %v855_v2  ;;  %s872_s17 = scalar_lea.vmem %s961_s0, %s741_s14  ;;  %s940_s22 = scalar_lea.vmem %s963_s2, %s709_s19 }
   0xe   : > { %770 = vmatprep.subr.bf16.mxu0 %v825_v1  ;;  %776 = vmatprep.subr.bf16.mxu1 %v825_v1  ;;  %v152_v3 = vld [vmem:[%s872_s17] sm:$0xff]  ;;  %v153_v4 = vld [vmem:[%s872_s17 + $0x8] sm:$0xff]  ;;  %v711_v5 = vld [vmem:[%s872_s17 + $0x10] sm:$0xff] }
   0xf   : > { %760 = vmatprep.mubr.msk.bf16.mxu0 %vm826_vm1, %v825_v1  ;;  %766 = vmatprep.mubr.msk.bf16.mxu1 %vm826_vm1, %v825_v1  ;;  %v712_v6 = vld [vmem:[%s872_s17 + $0x18] sm:$0xff]  ;;  %v715_v7 = vld [vmem:[%s872_s17 + $0x20] sm:$0xff]  ;;  %v719_v8 = vld [vmem:[%s872_s17 + $0x30] sm:$0xff] }
  0x10   : > { %155 = vrot.lane.b32.xlu0 %v152_v3, %s827_s18  ;;  %161 = vrot.lane.b32.xlu1 %v153_v4, %s827_s18  ;;  %v716_v9 = vld [vmem:[%s872_s17 + $0x28] sm:$0xff]  ;;  %v720_v10 = vld [vmem:[%s872_s17 + $0x38] sm:$0xff] }
  0x11   : > { %v723_v11 = vld [vmem:[%s872_s17 + $0x40] sm:$0xff]  ;;  %v727_v12 = vld [vmem:[%s872_s17 + $0x50] sm:$0xff]  ;;  %v724_v13 = vld [vmem:[%s872_s17 + $0x48] sm:$0xff] }
  0x12   : > { %v728_v14 = vld [vmem:[%s872_s17 + $0x58] sm:$0xff]  ;;  %v887_v15 = vld [vmem:[%s872_s17 + $0x60] sm:$0xff]  ;;  %v890_v16 = vld [vmem:[%s872_s17 + $0x70] sm:$0xff] }
  0x13   : > { %v895_v17 = vld [vmem:[%s872_s17 + $0x68] sm:$0xff]  ;;  %v898_v18 = vld [vmem:[%s872_s17 + $0x78] sm:$0xff] }
  0x14   : > { %221 = vrot.lane.b32.xlu0 %v711_v5, %s827_s18  ;;  %227 = vrot.lane.b32.xlu1 %v712_v6, %s827_s18 }
  0x18   : > { %282 = vrot.lane.b32.xlu0 %v715_v7, %s827_s18  ;;  %343 = vrot.lane.b32.xlu1 %v719_v8, %s827_s18 }
  0x1c   : > { %288 = vrot.lane.b32.xlu0 %v716_v9, %s827_s18  ;;  %349 = vrot.lane.b32.xlu1 %v720_v10, %s827_s18 }
  0x20   : > { %404 = vrot.lane.b32.xlu0 %v723_v11, %s827_s18  ;;  %465 = vrot.lane.b32.xlu1 %v727_v12, %s827_s18 }
  0x24   : > { %410 = vrot.lane.b32.xlu0 %v724_v13, %s827_s18  ;;  %471 = vrot.lane.b32.xlu1 %v728_v14, %s827_s18 }
  0x28   : > { %526 = vrot.lane.b32.xlu0 %v887_v15, %s827_s18  ;;  %587 = vrot.lane.b32.xlu1 %v890_v16, %s827_s18 }
  0x2c   : > { %532 = vrot.lane.b32.xlu0 %v895_v17, %s827_s18  ;;  %593 = vrot.lane.b32.xlu1 %v898_v18, %s827_s18 }
  0x82   : > { %v156_v19 = vpop.permute.xlu0 %155  ;;  %v162_v20 = vpop.permute.xlu1 %161 }
  0x83   : > { %v158_v21 = vadd.f32 %v156_v19, %v152_v3 }
  0x85   : > { %v159_v22 = vadd.f32 %v158_v21, %v153_v4 }
  0x86   : > { %v222_v23 = vpop.permute.xlu0 %221  ;;  %v228_v24 = vpop.permute.xlu1 %227 }
  0x87   : > { %v164_v25 = vadd.f32 %v162_v20, %v159_v22  ;;  %v224_v26 = vadd.f32 %v711_v5, %v222_v23 }
  0x89   : > { %v165_v27 = vmul.f32 0.25, %v164_v25  ;;  %v225_v28 = vadd.f32 %v712_v6, %v224_v26 }
  0x8a   : > { %v283_v29 = vpop.permute.xlu0 %282  ;;  %v344_v30 = vpop.permute.xlu1 %343 }
  0x8b   : > { %v166_v31 = vpack.c.bf16 %v165_v27, %v165_v27  ;;  %v230_v32 = vadd.f32 %v228_v24, %v225_v28  ;;  %v285_v33 = vadd.f32 %v715_v7, %v283_v29  ;;  %v346_v34 = vadd.f32 %v719_v8, %v344_v30 }
  0x8d   : > { %v231_v35 = vmul.f32 0.25, %v230_v32  ;;  %761 = vmatmul.mubr.msk.bf16.vlgmr.msra.gmra.mxu0 %vm167_vm2, %v166_v31  ;;  %v286_v36 = vadd.f32 %v716_v9, %v285_v33  ;;  %v347_v37 = vadd.f32 %v720_v10, %v346_v34 }
  0x8e   : > { %v289_v38 = vpop.permute.xlu0 %288  ;;  %771 = vmatpush3.bf16.msra.mxu0 %v855_v2  ;;  %v350_v39 = vpop.permute.xlu1 %349  ;;  %772 = vmatprep.mubr.msk.bf16.mxu0 %vm826_vm1, %v825_v1 }
  0x8f   : > { %v232_v40 = vpack.c.bf16 %v231_v35, %v231_v35  ;;  %v291_v41 = vadd.f32 %v289_v38, %v286_v36  ;;  %v352_v42 = vadd.f32 %v350_v39, %v347_v37  ;;  %782 = vmatprep.subr.bf16.mxu0 %v825_v1 }
  0x91   : > { %v292_v43 = vmul.f32 0.25, %v291_v41  ;;  %767 = vmatmul.mubr.msk.bf16.vlgmr.msra.gmra.mxu1 %vm167_vm2, %v232_v40  ;;  %v353_v44 = vmul.f32 0.25, %v352_v42 }
  0x92   : > { %777 = vmatpush3.bf16.msra.mxu1 %v855_v2  ;;  %v405_v45 = vpop.permute.xlu0 %404  ;;  %v466_v46 = vpop.permute.xlu1 %465  ;;  %778 = vmatprep.mubr.msk.bf16.mxu1 %vm826_vm1, %v825_v1 }
  0x93   : > { %v293_v47 = vpack.c.bf16 %v292_v43, %v292_v43  ;;  %v407_v48 = vadd.f32 %v723_v11, %v405_v45  ;;  %v468_v49 = vadd.f32 %v727_v12, %v466_v46  ;;  %788 = vmatprep.subr.bf16.mxu1 %v825_v1  ;;  %v354_v50 = vpack.c.bf16 %v353_v44, %v353_v44 }
  0x95   : > { %773 = vmatmul.mubr.msk.bf16.vlgmr.msra.gmra.mxu0 %vm167_vm2, %v293_v47  ;;  %v408_v51 = vadd.f32 %v724_v13, %v407_v48  ;;  %v469_v52 = vadd.f32 %v728_v14, %v468_v49 }
  0x96   : > { %v411_v53 = vpop.permute.xlu0 %410  ;;  %783 = vmatpush3.bf16.msra.mxu0 %v855_v2  ;;  %v472_v54 = vpop.permute.xlu1 %471  ;;  %784 = vmatprep.mubr.msk.bf16.mxu0 %vm826_vm1, %v825_v1 }
  0x97   : > { %v413_v55 = vadd.f32 %v411_v53, %v408_v51  ;;  %v474_v56 = vadd.f32 %v472_v54, %v469_v52  ;;  %794 = vmatprep.subr.bf16.mxu0 %v825_v1 }
  0x99   : > { %v414_v57 = vmul.f32 0.25, %v413_v55  ;;  %779 = vmatmul.mubr.msk.bf16.vlgmr.msra.gmra.mxu1 %vm167_vm2, %v354_v50  ;;  %v475_v58 = vmul.f32 0.25, %v474_v56 }
  0x9a   : > { %789 = vmatpush3.bf16.msra.mxu1 %v855_v2  ;;  %v527_v59 = vpop.permute.xlu0 %526  ;;  %v588_v60 = vpop.permute.xlu1 %587  ;;  %790 = vmatprep.mubr.msk.bf16.mxu1 %vm826_vm1, %v825_v1 }
  0x9b   : > { %v415_v61 = vpack.c.bf16 %v414_v57, %v414_v57  ;;  %v529_v62 = vadd.f32 %v887_v15, %v527_v59  ;;  %v590_v63 = vadd.f32 %v890_v16, %v588_v60  ;;  %800 = vmatprep.subr.bf16.mxu1 %v825_v1  ;;  %v476_v0 = vpack.c.bf16 %v475_v58, %v475_v58 }
  0x9d   : > { %785 = vmatmul.mubr.msk.bf16.vlgmr.msra.gmra.mxu0 %vm167_vm2, %v415_v61  ;;  %v530_v3 = vadd.f32 %v895_v17, %v529_v62  ;;  %v591_v4 = vadd.f32 %v898_v18, %v590_v63 }
  0x9e   : > { %v533_v5 = vpop.permute.xlu0 %532  ;;  %795 = vmatpush3.bf16.msra.mxu0 %v855_v2  ;;  %v594_v6 = vpop.permute.xlu1 %593  ;;  %796 = vmatprep.mubr.msk.bf16.mxu0 %vm826_vm1, %v825_v1 }
  0x9f   : > { %v535_v7 = vadd.f32 %v533_v5, %v530_v3  ;;  %v596_v8 = vadd.f32 %v594_v6, %v591_v4 }
  0xa1   : > { %v536_v9 = vmul.f32 0.25, %v535_v7  ;;  %791 = vmatmul.mubr.msk.bf16.vlgmr.msra.gmra.mxu1 %vm167_vm2, %v476_v0  ;;  %v597_v10 = vmul.f32 0.25, %v596_v8 }
  0xa2   : > { %801 = vmatpush3.bf16.msra.mxu1 %v855_v2  ;;  %802 = vmatprep.mubr.msk.bf16.mxu1 %vm826_vm1, %v825_v1 }
  0xa3   : > { %v537_v11 = vpack.c.bf16 %v536_v9, %v536_v9  ;;  %v598_v12 = vpack.c.bf16 %v597_v10, %v597_v10 }
  0xa5   : > { %797 = vmatmul.mubr.msk.bf16.vlgmr.msra.gmra.mxu0 %vm167_vm2, %v537_v11 }
  0xa9   : > { %803 = vmatmul.mubr.msk.bf16.vlgmr.msra.gmra.mxu1 %vm167_vm2, %v598_v12 }
 0x14d   : > { %v209_v2 = vpop.f32.mrf.mxu0 }
 0x14e   : > { %216 = vst.msk [vmem:[%s940_s22] sm:$0xff] %vm215_vm3, %v209_v2 }
 0x14f   : > { %v762_v1 = vpop.f32.mrf.mxu0 }
 0x151   : > { %v212_v13 = vpop.f32.mrf.mxu0  ;;  %v270_v14 = vpop.f32.mrf.mxu1 }
 0x152   : > { %714 = vst.msk [vmem:[%s940_s22 + $0x8] sm:$0xff] %vm215_vm3, %v270_v14 }
 0x153   : > { %v763_v15 = vpop.f32.mrf.mxu0  ;;  %v768_v16 = vpop.f32.mrf.mxu1 }
 0x155   : > { %v273_v17 = vpop.f32.mrf.mxu1  ;;  %v331_v18 = vpop.f32.mrf.mxu0 }
 0x156   : > { %718 = vst.msk [vmem:[%s940_s22 + $0x10] sm:$0xff] %vm215_vm3, %v331_v18 }
 0x157   : > { %v769_v19 = vpop.f32.mrf.mxu1  ;;  %v774_v20 = vpop.f32.mrf.mxu0 }
 0x159   : > { %v334_v21 = vpop.f32.mrf.mxu0  ;;  %v392_v22 = vpop.f32.mrf.mxu1 }
 0x15a   : > { %722 = vst.msk [vmem:[%s940_s22 + $0x18] sm:$0xff] %vm215_vm3, %v392_v22 }
 0x15b   : > { %v775_v23 = vpop.f32.mrf.mxu0  ;;  %v780_v24 = vpop.f32.mrf.mxu1 }
 0x15d   : > { %v395_v25 = vpop.f32.mrf.mxu1  ;;  %v453_v26 = vpop.f32.mrf.mxu0 }
 0x15e   : > { %726 = vst.msk [vmem:[%s940_s22 + $0x20] sm:$0xff] %vm215_vm3, %v453_v26 }
 0x15f   : > { %v781_v27 = vpop.f32.mrf.mxu1  ;;  %v786_v28 = vpop.f32.mrf.mxu0 }
 0x161   : > { %v456_v29 = vpop.f32.mrf.mxu0  ;;  %v514_v30 = vpop.f32.mrf.mxu1 }
 0x162   : > { %730 = vst.msk [vmem:[%s940_s22 + $0x28] sm:$0xff] %vm215_vm3, %v514_v30 }
 0x163   : > { %v787_v31 = vpop.f32.mrf.mxu0  ;;  %v792_v32 = vpop.f32.mrf.mxu1 }
 0x165   : > { %v517_v33 = vpop.f32.mrf.mxu1  ;;  %v575_v34 = vpop.f32.mrf.mxu0 }
 0x166   : > { %734 = vst.msk [vmem:[%s940_s22 + $0x30] sm:$0xff] %vm215_vm3, %v575_v34 }
 0x167   : > { %v793_v35 = vpop.f32.mrf.mxu1  ;;  %v798_v36 = vpop.f32.mrf.mxu0 }
 0x169   : > { %v578_v37 = vpop.f32.mrf.mxu0  ;;  %v636_v38 = vpop.f32.mrf.mxu1 }
 0x16a   : > { %738 = vst.msk [vmem:[%s940_s22 + $0x38] sm:$0xff] %vm215_vm3, %v636_v38 }
 0x16b   : > { %v799_v39 = vpop.f32.mrf.mxu0  ;;  %v804_v40 = vpop.f32.mrf.mxu1 }
 0x16d   : > { %v639_v41 = vpop.f32.mrf.mxu1 }
 0x16f   : > { %v805_v42 = vpop.f32.mrf.mxu1 }
 0x170 PF: > { %s12_s9 = sadd.s32 1, %s823_s9  }
 0x171   : > { %p9_p4 = scmp.ge.s32.totalorder %s12_s9, 4  }
 0x173   :  { %11 = sbr.rel (!%p9_p4) target bundleno = 1 (0x1), region = 72 }

</bundles_post_ra>
